<compile_context>
chip_gen: v6e
topology: v6e:2x2x1
jax: 0.10.0
libtpu: 0.0.40
codegen_flags: <defaults>
</compile_context>

<pallas_src>
import functools
import math

import jax
import jax.numpy as jnp
from jax import lax
from jax.experimental import pallas as pl
from jax.experimental.pallas import tpu as pltpu


def _round_up(a: int, b: int) -> int:
    return (a + b - 1) // b * b


def pna_xtoy_kernel(x_ref, w_ref, b_ref, c_ref, o_ref,
                    sum_ref, sumsq_ref, min_ref, max_ref,
                    *, n_true: int, n_rows: int, n_tile: int,
                    fold: int, dx: int, needs_mask: bool):
    # x_ref : (BS_T, N_T, fold*dx)  streamed X tile (lane-dense reshaped view)
    # w_ref : (4, dx, dy_pad)       resident weight, one block per statistic
    # b_ref : (1, dy_pad)           resident bias
    # c_ref : (BS_T, fold*dx)       per-row shift (x[:, 0, :] tiled over groups)
    # o_ref : (BS_T, dy_pad)        lane-dense output block
    # scratch: 4 x (BS_T, fold*dx)  f32 running sum / sumsq / min / max
    j = pl.program_id(1)
    n_steps = pl.num_programs(1)

    x = x_ref[...].astype(jnp.float32)
    c = c_ref[...].astype(jnp.float32)

    @pl.when(j == 0)
    def _init():
        sum_ref[...] = jnp.zeros_like(sum_ref)
        sumsq_ref[...] = jnp.zeros_like(sumsq_ref)
        min_ref[...] = jnp.full_like(min_ref, jnp.inf)
        max_ref[...] = jnp.full_like(max_ref, -jnp.inf)

    def _accumulate(masked):
        xc = x - c[:, None, :]                      # shifted values (stable var)
        if masked:
            row = j * n_tile + lax.broadcasted_iota(jnp.int32, x.shape, 1)
            valid = row < n_rows                    # whole reshaped rows only
            xs = jnp.where(valid, xc, 0.0)
            xq = jnp.where(valid, xc * xc, 0.0)
            xmn = jnp.where(valid, x, jnp.inf)
            xmx = jnp.where(valid, x, -jnp.inf)
        else:
            xs, xq, xmn, xmx = xc, xc * xc, x, x
        sum_ref[...] = sum_ref[...] + jnp.sum(xs, axis=1)
        sumsq_ref[...] = sumsq_ref[...] + jnp.sum(xq, axis=1)
        min_ref[...] = jnp.minimum(min_ref[...], jnp.min(xmn, axis=1))
        max_ref[...] = jnp.maximum(max_ref[...], jnp.max(xmx, axis=1))

    if needs_mask:
        # Only the ragged last n tile pays for the iota/compare/select masking.
        @pl.when(j < n_steps - 1)
        def _hot():
            _accumulate(False)

        @pl.when(j == n_steps - 1)
        def _tail():
            _accumulate(True)
    else:
        _accumulate(False)

    @pl.when(j == n_steps - 1)
    def _finalize():
        def fold_lanes(a, op):
            # (BS_T, fold*dx) -> (BS_T, dx): pairwise tree over lane groups.
            width = a.shape[-1]
            while width > dx:
                half = width // 2
                a = op(a[:, :half], a[:, half:width])
                width = half
            return a

        s = fold_lanes(sum_ref[...], jnp.add)
        q = fold_lanes(sumsq_ref[...], jnp.add)
        mn = fold_lanes(min_ref[...], jnp.minimum)
        mx = fold_lanes(max_ref[...], jnp.maximum)
        c0 = c[:, :dx]                              # identical in every group

        inv_n = jnp.float32(1.0 / n_true)
        mean = c0 + s * inv_n
        # Shifted one-pass unbiased variance: var = (Q - S^2/n) / (n - 1).
        # TODO(synk): torch.std returns NaN for n == 1; we return 0.0 instead.
        inv_nm1 = jnp.float32(1.0 / max(n_true - 1, 1))
        var = (q - s * s * inv_n) * inv_nm1
        std = jnp.sqrt(jnp.maximum(var, 0.0))

        out = (jnp.dot(mean, w_ref[0], preferred_element_type=jnp.float32)
               + jnp.dot(mn, w_ref[1], preferred_element_type=jnp.float32)
               + jnp.dot(mx, w_ref[2], preferred_element_type=jnp.float32)
               + jnp.dot(std, w_ref[3], preferred_element_type=jnp.float32)
               + b_ref[...])
        o_ref[...] = out.astype(o_ref.dtype)


def pna_xtoy(x, weight, bias, *, _max_rows_per_tile=None):
    """PNA_Xtoy.forward.  x: (bs, n, dx); weight: (dy, 4*dx); bias: (dy,)."""
    bs, n, dx = x.shape
    dy = weight.shape[0]
    assert weight.shape == (dy, 4 * dx) and bias.shape == (dy,)

    x = x.astype(jnp.float32)

    # ---- lane-density fold: (bs, n, dx) -> (bs, n/F, F*dx), free reshape.
    fold = 1
    if dx < 128 and 128 % dx == 0:
        fold = 128 // dx
        while fold > 1 and n % fold != 0:
            fold //= 2
    dx_eff = fold * dx
    n_rows = n // fold
    x_r = x.reshape(bs, n_rows, dx_eff) if fold > 1 else x

    dx_lane = _round_up(dx_eff, 128)          # physical lane padding in VMEM
    dy_pad = _round_up(dy, 128)               # lane-dense output

    # ---- per-row shift for the numerically stable one-pass variance.
    shift = x[:, 0, :]                        # (bs, dx): first node's features
    if fold > 1:
        shift = jnp.tile(shift, (1, fold))    # same per-feature shift per group

    # ---- VMEM budget using *physically padded* tile sizes (v7x: 64 MiB phys).
    try:
        phys_vmem = int(pltpu.get_tpu_info().vmem_capacity_bytes)
    except Exception:
        phys_vmem = 64 * 1024 * 1024          # assume the smallest (v7x)
    vmem_limit = min((phys_vmem * 3) // 4, 96 * 1024 * 1024)

    # ---- batch tile: multiple of 8, >=2 tiles when bs allows (megacore).
    if bs <= 8:
        bs_t = bs
    else:
        bs_t = max(8, min(256, _round_up(pl.cdiv(bs, 4), 8)))

    resident = (2 * 4 * dx * dy_pad * 4              # weight (double-buffered)
                + 2 * dy_pad * 4                     # bias
                + 2 * max(bs_t, 8) * dy_pad * 4      # output tile
                + 2 * max(bs_t, 8) * dx_lane * 4     # shift tile
                + 4 * max(bs_t, 8) * dx_lane * 4)    # accumulator scratch
    x_budget = min(16 * 1024 * 1024,
                   max(512 * 1024, (vmem_limit - resident - (2 << 20)) // 2))
    # Shrink BS_T if even a minimal 8-row (padded) X tile would blow the budget.
    while bs_t > 8 and bs_t * 8 * dx_lane * 4 > x_budget:
        bs_t = max(8, (bs_t // 16) * 8)

    rows = max(8, (x_budget // (bs_t * dx_lane * 4)) // 8 * 8)
    if _max_rows_per_tile is not None:               # test hook (small shapes)
        rows = min(rows, max(8, (_max_rows_per_tile // 8) * 8))
    n_t = min(rows, n_rows)
    needs_mask = (n_rows % n_t) != 0

    x_tile_bytes = bs_t * _round_up(n_t, 8) * dx_lane * 4
    vmem_limit = min(phys_vmem,
                     max(vmem_limit, 2 * x_tile_bytes + resident + (4 << 20)))

    # ---- weight (dy, 4*dx) -> (4, dx, dy_pad); block k multiplies statistic k
    # (torch hstack order: mean, min, max, std).  dy is zero-padded to 128.
    w_blocks = jnp.transpose(weight.astype(jnp.float32), (1, 0)).reshape(4, dx, dy)
    if dy_pad != dy:
        w_blocks = jnp.pad(w_blocks, ((0, 0), (0, 0), (0, dy_pad - dy)))
        b2 = jnp.pad(bias.astype(jnp.float32), (0, dy_pad - dy)).reshape(1, dy_pad)
    else:
        b2 = bias.astype(jnp.float32).reshape(1, dy_pad)

    grid = (pl.cdiv(bs, bs_t), pl.cdiv(n_rows, n_t))

    cost = pl.CostEstimate(
        flops=6 * bs * n * dx + 2 * bs * 4 * dx * dy_pad,
        transcendentals=bs * dx,
        bytes_accessed=(bs * n * dx * 4 + 4 * dx * dy_pad * 4 + dy_pad * 4
                        + bs * dx_eff * 4 + bs * dy_pad * 4),
    )

    kernel = functools.partial(
        pna_xtoy_kernel, n_true=n, n_rows=n_rows, n_tile=n_t,
        fold=fold, dx=dx, needs_mask=needs_mask)

    out = pl.pallas_call(
        kernel,
        out_shape=jax.ShapeDtypeStruct((bs, dy_pad), jnp.float32),
        grid_spec=pltpu.PrefetchScalarGridSpec(
            num_scalar_prefetch=0,
            grid=grid,
            in_specs=[
                # X streamed tile-by-tile (double-buffered DMA, single HBM pass)
                pl.BlockSpec((bs_t, n_t, dx_eff), lambda i, j: (i, j, 0)),
                # weights / bias / shift stay resident (constant index maps)
                pl.BlockSpec((4, dx, dy_pad), lambda i, j: (0, 0, 0)),
                pl.BlockSpec((1, dy_pad), lambda i, j: (0, 0)),
                pl.BlockSpec((bs_t, dx_eff), lambda i, j: (i, 0)),
            ],
            out_specs=pl.BlockSpec((bs_t, dy_pad), lambda i, j: (i, 0)),
            scratch_shapes=[pltpu.VMEM((bs_t, dx_eff), jnp.float32)
                            for _ in range(4)],
        ),
        compiler_params=pltpu.CompilerParams(
            dimension_semantics=("parallel", "arbitrary"),
            vmem_limit_bytes=int(vmem_limit),
        ),
        cost_estimate=cost,
    )(x_r, w_blocks, b2, shift)

    return out[:, :dy]


def pna_xtoy_ref(x, weight, bias):
    m = jnp.mean(x, axis=1)
    mi = jnp.min(x, axis=1)
    ma = jnp.max(x, axis=1)
    std = jnp.std(x, axis=1, ddof=1)
    z = jnp.concatenate([m, mi, ma, std], axis=-1)
    return jnp.dot(z, weight.T, precision=jax.lax.Precision.HIGHEST) + bias


if __name__ == "__main__":
    bs, n, dx, dy = 2, 8, 16, 32

    key = jax.random.PRNGKey(0)
    kx, kw, kb, kx2 = jax.random.split(key, 4)

    x = jax.random.normal(kx, (bs, n, dx), dtype=jnp.float32)

    # Deterministic nn.Linear(4*dx, dy)-style init: U(-1/sqrt(fan_in), ...)
    fan_in = 4 * dx
    bound = 1.0 / math.sqrt(fan_in)
    weight = jax.random.uniform(kw, (dy, fan_in), jnp.float32, -bound, bound)
    bias = jax.random.uniform(kb, (dy,), jnp.float32, -bound, bound)

    out = jax.block_until_ready(pna_xtoy(x, weight, bias))
    ref = pna_xtoy_ref(x, weight, bias)
    assert out.shape == (bs, dy), out.shape
    assert bool(jnp.allclose(out, ref, atol=1e-2, rtol=1e-2)), (
        "mismatch vs reference: max abs err "
        f"{float(jnp.max(jnp.abs(out - ref)))}")

    # Second small case: multi-tile accumulation, ragged masked tail and
    # partial batch blocks (bs=10 not a multiple of the 8-row batch tile).
    bs2, n2 = 10, 176
    x2 = jax.random.normal(kx2, (bs2, n2, dx), dtype=jnp.float32)
    out2 = jax.block_until_ready(pna_xtoy(x2, weight, bias, _max_rows_per_tile=8))
    ref2 = pna_xtoy_ref(x2, weight, bias)
    assert out2.shape == (bs2, dy), out2.shape
    assert bool(jnp.allclose(out2, ref2, atol=1e-2, rtol=1e-2)), (
        "mismatch vs reference (tiled case): max abs err "
        f"{float(jnp.max(jnp.abs(out2 - ref2)))}")

    print("KERNEL_OK")
</pallas_src>

<mosaic_0001>
module attributes {stable_mosaic.version = 11 : i64} {
  func.func @pna_xtoy_kernel(%arg0: i32, %arg1: i32, %arg2: memref<2x1x128xf32, #tpu.memory_space<vmem>>, %arg3: memref<4x16x128xf32, #tpu.memory_space<vmem>>, %arg4: memref<1x128xf32, #tpu.memory_space<vmem>>, %arg5: memref<2x128xf32, #tpu.memory_space<vmem>>, %arg6: memref<2x128xf32, #tpu.memory_space<vmem>>, %arg7: memref<2x128xf32, #tpu.memory_space<vmem>>, %arg8: memref<2x128xf32, #tpu.memory_space<vmem>>, %arg9: memref<2x128xf32, #tpu.memory_space<vmem>>, %arg10: memref<2x128xf32, #tpu.memory_space<vmem>>) attributes {dimension_semantics = [#tpu.dimension_semantics<parallel>, #tpu.dimension_semantics<arbitrary>], iteration_bounds = array<i64: 1, 1>, scalar_prefetch = 0 : i64, scratch_operands = 4 : i64, tpu.core_type = #tpu.core_type<tc>, window_params = [{transform_indices = @transform_0, window_bounds = array<i64: 2, 1, 128>}, {pipeline_mode = #tpu.pipeline_mode<synchronous>, transform_indices = @transform_1, window_bounds = array<i64: 4, 16, 128>}, {pipeline_mode = #tpu.pipeline_mode<synchronous>, transform_indices = @transform_2, window_bounds = array<i64: 1, 128>}, {transform_indices = @transform_3, window_bounds = array<i64: 2, 128>}, {transform_indices = @transform_4, window_bounds = array<i64: 2, 128>}]} {
    %c0 = arith.constant 0 : index
    %c0_0 = arith.constant 0 : index
    %c0_1 = arith.constant 0 : index
    %0 = vector.load %arg2[%c0, %c0_0, %c0_1] : memref<2x1x128xf32, #tpu.memory_space<vmem>>, vector<2x1x128xf32>
    %c0_2 = arith.constant 0 : index
    %c0_3 = arith.constant 0 : index
    %1 = vector.load %arg5[%c0_2, %c0_3] : memref<2x128xf32, #tpu.memory_space<vmem>>, vector<2x128xf32>
    %c0_i32 = arith.constant 0 : i32
    %2 = arith.cmpi eq, %arg1, %c0_i32 : i32
    %3 = arith.extui %2 : i1 to i32
    %c0_i32_4 = arith.constant 0 : i32
    %4 = arith.cmpi ne, %3, %c0_i32_4 : i32
    scf.if %4 {
      %cst_26 = arith.constant 0.000000e+00 : f32
      %27 = vector.broadcast %cst_26 : f32 to vector<2x128xf32>
      %c0_27 = arith.constant 0 : index
      %c0_28 = arith.constant 0 : index
      %28 = vector.load %arg7[%c0_27, %c0_28] : memref<2x128xf32, #tpu.memory_space<vmem>>, vector<2x128xf32>
      tpu.vector_store %arg7[%c0_27, %c0_28], %27 {strides = array<i32>} : memref<2x128xf32, #tpu.memory_space<vmem>>, vector<2x128xf32>,
      %cst_29 = arith.constant 0.000000e+00 : f32
      %29 = vector.broadcast %cst_29 : f32 to vector<2x128xf32>
      %c0_30 = arith.constant 0 : index
      %c0_31 = arith.constant 0 : index
      %30 = vector.load %arg8[%c0_30, %c0_31] : memref<2x128xf32, #tpu.memory_space<vmem>>, vector<2x128xf32>
      tpu.vector_store %arg8[%c0_30, %c0_31], %29 {strides = array<i32>} : memref<2x128xf32, #tpu.memory_space<vmem>>, vector<2x128xf32>,
      %cst_32 = arith.constant 0x7F800000 : f32
      %31 = vector.broadcast %cst_32 : f32 to vector<2x128xf32>
      %c0_33 = arith.constant 0 : index
      %c0_34 = arith.constant 0 : index
      %32 = vector.load %arg9[%c0_33, %c0_34] : memref<2x128xf32, #tpu.memory_space<vmem>>, vector<2x128xf32>
      tpu.vector_store %arg9[%c0_33, %c0_34], %31 {strides = array<i32>} : memref<2x128xf32, #tpu.memory_space<vmem>>, vector<2x128xf32>,
      %cst_35 = arith.constant 0xFF800000 : f32
      %33 = vector.broadcast %cst_35 : f32 to vector<2x128xf32>
      %c0_36 = arith.constant 0 : index
      %c0_37 = arith.constant 0 : index
      %34 = vector.load %arg10[%c0_36, %c0_37] : memref<2x128xf32, #tpu.memory_space<vmem>>, vector<2x128xf32>
      tpu.vector_store %arg10[%c0_36, %c0_37], %33 {strides = array<i32>} : memref<2x128xf32, #tpu.memory_space<vmem>>, vector<2x128xf32>,
    } else {
    }
    %5 = vector.shape_cast %1 : vector<2x128xf32> to vector<2x1x128xf32>
    %6 = arith.subf %0, %5 : vector<2x1x128xf32>
    %7 = arith.mulf %6, %6 : vector<2x1x128xf32>
    %c0_5 = arith.constant 0 : index
    %c0_6 = arith.constant 0 : index
    %8 = vector.load %arg7[%c0_5, %c0_6] : memref<2x128xf32, #tpu.memory_space<vmem>>, vector<2x128xf32>
    %cst = arith.constant dense<0.000000e+00> : vector<2x128xf32>
    %9 = vector.multi_reduction <add>, %6, %cst [1] : vector<2x1x128xf32> to vector<2x128xf32>
    %10 = arith.addf %8, %9 : vector<2x128xf32>
    %c0_7 = arith.constant 0 : index
    %c0_8 = arith.constant 0 : index
    %11 = vector.load %arg7[%c0_7, %c0_8] : memref<2x128xf32, #tpu.memory_space<vmem>>, vector<2x128xf32>
    tpu.vector_store %arg7[%c0_7, %c0_8], %10 {strides = array<i32>} : memref<2x128xf32, #tpu.memory_space<vmem>>, vector<2x128xf32>,
    %c0_9 = arith.constant 0 : index
    %c0_10 = arith.constant 0 : index
    %12 = vector.load %arg8[%c0_9, %c0_10] : memref<2x128xf32, #tpu.memory_space<vmem>>, vector<2x128xf32>
    %cst_11 = arith.constant dense<0.000000e+00> : vector<2x128xf32>
    %13 = vector.multi_reduction <add>, %7, %cst_11 [1] : vector<2x1x128xf32> to vector<2x128xf32>
    %14 = arith.addf %12, %13 : vector<2x128xf32>
    %c0_12 = arith.constant 0 : index
    %c0_13 = arith.constant 0 : index
    %15 = vector.load %arg8[%c0_12, %c0_13] : memref<2x128xf32, #tpu.memory_space<vmem>>, vector<2x128xf32>
    tpu.vector_store %arg8[%c0_12, %c0_13], %14 {strides = array<i32>} : memref<2x128xf32, #tpu.memory_space<vmem>>, vector<2x128xf32>,
    %c0_14 = arith.constant 0 : index
    %c0_15 = arith.constant 0 : index
    %16 = vector.load %arg9[%c0_14, %c0_15] : memref<2x128xf32, #tpu.memory_space<vmem>>, vector<2x128xf32>
    %cst_16 = arith.constant dense<0x7F800000> : vector<2x128xf32>
    %17 = vector.multi_reduction <minimumf>, %0, %cst_16 [1] : vector<2x1x128xf32> to vector<2x128xf32>
    %18 = arith.minimumf %16, %17 : vector<2x128xf32>
    %c0_17 = arith.constant 0 : index
    %c0_18 = arith.constant 0 : index
    %19 = vector.load %arg9[%c0_17, %c0_18] : memref<2x128xf32, #tpu.memory_space<vmem>>, vector<2x128xf32>
    tpu.vector_store %arg9[%c0_17, %c0_18], %18 {strides = array<i32>} : memref<2x128xf32, #tpu.memory_space<vmem>>, vector<2x128xf32>,
    %c0_19 = arith.constant 0 : index
    %c0_20 = arith.constant 0 : index
    %20 = vector.load %arg10[%c0_19, %c0_20] : memref<2x128xf32, #tpu.memory_space<vmem>>, vector<2x128xf32>
    %cst_21 = arith.constant dense<0xFF800000> : vector<2x128xf32>
    %21 = vector.multi_reduction <maximumf>, %0, %cst_21 [1] : vector<2x1x128xf32> to vector<2x128xf32>
    %22 = arith.maximumf %20, %21 : vector<2x128xf32>
    %c0_22 = arith.constant 0 : index
    %c0_23 = arith.constant 0 : index
    %23 = vector.load %arg10[%c0_22, %c0_23] : memref<2x128xf32, #tpu.memory_space<vmem>>, vector<2x128xf32>
    tpu.vector_store %arg10[%c0_22, %c0_23], %22 {strides = array<i32>} : memref<2x128xf32, #tpu.memory_space<vmem>>, vector<2x128xf32>,
    %c0_i32_24 = arith.constant 0 : i32
    %24 = arith.cmpi eq, %arg1, %c0_i32_24 : i32
    %25 = arith.extui %24 : i1 to i32
    %c0_i32_25 = arith.constant 0 : i32
    %26 = arith.cmpi ne, %25, %c0_i32_25 : i32
    scf.if %26 {
      %c0_26 = arith.constant 0 : index
      %c0_27 = arith.constant 0 : index
      %27 = vector.load %arg7[%c0_26, %c0_27] : memref<2x128xf32, #tpu.memory_space<vmem>>, vector<2x128xf32>
      %28 = vector.extract_strided_slice %27 {offsets = [0, 0], sizes = [2, 64], strides = [1, 1]} : vector<2x128xf32> to vector<2x64xf32>
      %29 = vector.extract_strided_slice %27 {offsets = [0, 64], sizes = [2, 64], strides = [1, 1]} : vector<2x128xf32> to vector<2x64xf32>
      %30 = arith.addf %28, %29 : vector<2x64xf32>
      %31 = vector.extract_strided_slice %30 {offsets = [0, 0], sizes = [2, 32], strides = [1, 1]} : vector<2x64xf32> to vector<2x32xf32>
      %32 = vector.extract_strided_slice %30 {offsets = [0, 32], sizes = [2, 32], strides = [1, 1]} : vector<2x64xf32> to vector<2x32xf32>
      %33 = arith.addf %31, %32 : vector<2x32xf32>
      %34 = vector.extract_strided_slice %33 {offsets = [0, 0], sizes = [2, 16], strides = [1, 1]} : vector<2x32xf32> to vector<2x16xf32>
      %35 = vector.extract_strided_slice %33 {offsets = [0, 16], sizes = [2, 16], strides = [1, 1]} : vector<2x32xf32> to vector<2x16xf32>
      %36 = arith.addf %34, %35 : vector<2x16xf32>
      %c0_28 = arith.constant 0 : index
      %c0_29 = arith.constant 0 : index
      %37 = vector.load %arg8[%c0_28, %c0_29] : memref<2x128xf32, #tpu.memory_space<vmem>>, vector<2x128xf32>
      %38 = vector.extract_strided_slice %37 {offsets = [0, 0], sizes = [2, 64], strides = [1, 1]} : vector<2x128xf32> to vector<2x64xf32>
      %39 = vector.extract_strided_slice %37 {offsets = [0, 64], sizes = [2, 64], strides = [1, 1]} : vector<2x128xf32> to vector<2x64xf32>
      %40 = arith.addf %38, %39 : vector<2x64xf32>
      %41 = vector.extract_strided_slice %40 {offsets = [0, 0], sizes = [2, 32], strides = [1, 1]} : vector<2x64xf32> to vector<2x32xf32>
      %42 = vector.extract_strided_slice %40 {offsets = [0, 32], sizes = [2, 32], strides = [1, 1]} : vector<2x64xf32> to vector<2x32xf32>
      %43 = arith.addf %41, %42 : vector<2x32xf32>
      %44 = vector.extract_strided_slice %43 {offsets = [0, 0], sizes = [2, 16], strides = [1, 1]} : vector<2x32xf32> to vector<2x16xf32>
      %45 = vector.extract_strided_slice %43 {offsets = [0, 16], sizes = [2, 16], strides = [1, 1]} : vector<2x32xf32> to vector<2x16xf32>
      %46 = arith.addf %44, %45 : vector<2x16xf32>
      %c0_30 = arith.constant 0 : index
      %c0_31 = arith.constant 0 : index
      %47 = vector.load %arg9[%c0_30, %c0_31] : memref<2x128xf32, #tpu.memory_space<vmem>>, vector<2x128xf32>
      %48 = vector.extract_strided_slice %47 {offsets = [0, 0], sizes = [2, 64], strides = [1, 1]} : vector<2x128xf32> to vector<2x64xf32>
      %49 = vector.extract_strided_slice %47 {offsets = [0, 64], sizes = [2, 64], strides = [1, 1]} : vector<2x128xf32> to vector<2x64xf32>
      %50 = arith.minimumf %48, %49 : vector<2x64xf32>
      %51 = vector.extract_strided_slice %50 {offsets = [0, 0], sizes = [2, 32], strides = [1, 1]} : vector<2x64xf32> to vector<2x32xf32>
      %52 = vector.extract_strided_slice %50 {offsets = [0, 32], sizes = [2, 32], strides = [1, 1]} : vector<2x64xf32> to vector<2x32xf32>
      %53 = arith.minimumf %51, %52 : vector<2x32xf32>
      %54 = vector.extract_strided_slice %53 {offsets = [0, 0], sizes = [2, 16], strides = [1, 1]} : vector<2x32xf32> to vector<2x16xf32>
      %55 = vector.extract_strided_slice %53 {offsets = [0, 16], sizes = [2, 16], strides = [1, 1]} : vector<2x32xf32> to vector<2x16xf32>
      %56 = arith.minimumf %54, %55 : vector<2x16xf32>
      %c0_32 = arith.constant 0 : index
      %c0_33 = arith.constant 0 : index
      %57 = vector.load %arg10[%c0_32, %c0_33] : memref<2x128xf32, #tpu.memory_space<vmem>>, vector<2x128xf32>
      %58 = vector.extract_strided_slice %57 {offsets = [0, 0], sizes = [2, 64], strides = [1, 1]} : vector<2x128xf32> to vector<2x64xf32>
      %59 = vector.extract_strided_slice %57 {offsets = [0, 64], sizes = [2, 64], strides = [1, 1]} : vector<2x128xf32> to vector<2x64xf32>
      %60 = arith.maximumf %58, %59 : vector<2x64xf32>
      %61 = vector.extract_strided_slice %60 {offsets = [0, 0], sizes = [2, 32], strides = [1, 1]} : vector<2x64xf32> to vector<2x32xf32>
      %62 = vector.extract_strided_slice %60 {offsets = [0, 32], sizes = [2, 32], strides = [1, 1]} : vector<2x64xf32> to vector<2x32xf32>
      %63 = arith.maximumf %61, %62 : vector<2x32xf32>
      %64 = vector.extract_strided_slice %63 {offsets = [0, 0], sizes = [2, 16], strides = [1, 1]} : vector<2x32xf32> to vector<2x16xf32>
      %65 = vector.extract_strided_slice %63 {offsets = [0, 16], sizes = [2, 16], strides = [1, 1]} : vector<2x32xf32> to vector<2x16xf32>
      %66 = arith.maximumf %64, %65 : vector<2x16xf32>
      %67 = vector.extract_strided_slice %1 {offsets = [0, 0], sizes = [2, 16], strides = [1, 1]} : vector<2x128xf32> to vector<2x16xf32>
      %cst_34 = arith.constant 1.250000e-01 : f32
      %68 = vector.broadcast %cst_34 : f32 to vector<2x16xf32>
      %69 = arith.mulf %36, %68 : vector<2x16xf32>
      %70 = arith.addf %67, %69 : vector<2x16xf32>
      %71 = arith.mulf %36, %36 : vector<2x16xf32>
      %cst_35 = arith.constant 1.250000e-01 : f32
      %72 = vector.broadcast %cst_35 : f32 to vector<2x16xf32>
      %73 = arith.mulf %71, %72 : vector<2x16xf32>
      %74 = arith.subf %46, %73 : vector<2x16xf32>
      %cst_36 = arith.constant 0.142857149 : f32
      %75 = vector.broadcast %cst_36 : f32 to vector<2x16xf32>
      %76 = arith.mulf %74, %75 : vector<2x16xf32>
      %cst_37 = arith.constant 0.000000e+00 : f32
      %77 = vector.broadcast %cst_37 : f32 to vector<2x16xf32>
      %78 = arith.maximumf %76, %77 : vector<2x16xf32>
      %79 = math.sqrt %78 : vector<2x16xf32>
      %c0_38 = arith.constant 0 : index
      %c0_39 = arith.constant 0 : index
      %c0_40 = arith.constant 0 : index
      %80 = vector.load %arg3[%c0_38, %c0_39, %c0_40] : memref<4x16x128xf32, #tpu.memory_space<vmem>>, vector<1x16x128xf32>
      %81 = vector.shape_cast %80 : vector<1x16x128xf32> to vector<16x128xf32>
      %cst_41 = arith.constant dense<0.000000e+00> : vector<2x128xf32>
      %82 = tpu.matmul %70, %81, %cst_41 {dimension_numbers = #tpu.dot_dimension_numbers<[1], [0], [0], [1], [0, 0, 1, 1], [], []>} : vector<2x16xf32>, vector<16x128xf32>, vector<2x128xf32> -> vector<2x128xf32>
      %c1 = arith.constant 1 : index
      %c0_42 = arith.constant 0 : index
      %c0_43 = arith.constant 0 : index
      %83 = vector.load %arg3[%c1, %c0_42, %c0_43] : memref<4x16x128xf32, #tpu.memory_space<vmem>>, vector<1x16x128xf32>
      %84 = vector.shape_cast %83 : vector<1x16x128xf32> to vector<16x128xf32>
      %cst_44 = arith.constant dense<0.000000e+00> : vector<2x128xf32>
      %85 = tpu.matmul %56, %84, %cst_44 {dimension_numbers = #tpu.dot_dimension_numbers<[1], [0], [0], [1], [0, 0, 1, 1], [], []>} : vector<2x16xf32>, vector<16x128xf32>, vector<2x128xf32> -> vector<2x128xf32>
      %86 = arith.addf %82, %85 : vector<2x128xf32>
      %c2 = arith.constant 2 : index
      %c0_45 = arith.constant 0 : index
      %c0_46 = arith.constant 0 : index
      %87 = vector.load %arg3[%c2, %c0_45, %c0_46] : memref<4x16x128xf32, #tpu.memory_space<vmem>>, vector<1x16x128xf32>
      %88 = vector.shape_cast %87 : vector<1x16x128xf32> to vector<16x128xf32>
      %cst_47 = arith.constant dense<0.000000e+00> : vector<2x128xf32>
      %89 = tpu.matmul %66, %88, %cst_47 {dimension_numbers = #tpu.dot_dimension_numbers<[1], [0], [0], [1], [0, 0, 1, 1], [], []>} : vector<2x16xf32>, vector<16x128xf32>, vector<2x128xf32> -> vector<2x128xf32>
      %90 = arith.addf %86, %89 : vector<2x128xf32>
      %c3 = arith.constant 3 : index
      %c0_48 = arith.constant 0 : index
      %c0_49 = arith.constant 0 : index
      %91 = vector.load %arg3[%c3, %c0_48, %c0_49] : memref<4x16x128xf32, #tpu.memory_space<vmem>>, vector<1x16x128xf32>
      %92 = vector.shape_cast %91 : vector<1x16x128xf32> to vector<16x128xf32>
      %cst_50 = arith.constant dense<0.000000e+00> : vector<2x128xf32>
      %93 = tpu.matmul %79, %92, %cst_50 {dimension_numbers = #tpu.dot_dimension_numbers<[1], [0], [0], [1], [0, 0, 1, 1], [], []>} : vector<2x16xf32>, vector<16x128xf32>, vector<2x128xf32> -> vector<2x128xf32>
      %94 = arith.addf %90, %93 : vector<2x128xf32>
      %c0_51 = arith.constant 0 : index
      %c0_52 = arith.constant 0 : index
      %95 = vector.load %arg4[%c0_51, %c0_52] : memref<1x128xf32, #tpu.memory_space<vmem>>, vector<1x128xf32>
      %96 = vector.broadcast %95 : vector<1x128xf32> to vector<2x128xf32>
      %97 = arith.addf %94, %96 : vector<2x128xf32>
      %c0_53 = arith.constant 0 : index
      %c0_54 = arith.constant 0 : index
      %98 = vector.load %arg6[%c0_53, %c0_54] : memref<2x128xf32, #tpu.memory_space<vmem>>, vector<2x128xf32>
      tpu.vector_store %arg6[%c0_53, %c0_54], %97 {strides = array<i32>} : memref<2x128xf32, #tpu.memory_space<vmem>>, vector<2x128xf32>,
    } else {
    }
    return
  }
  func.func @transform_0(%arg0: i32, %arg1: i32) -> (i32, i32, i32) {
    %c0_i32 = arith.constant 0 : i32
    %c0_i32_0 = arith.constant 0 : i32
    return %arg0, %arg1, %c0_i32 : i32, i32, i32
  }
  func.func @transform_1(%arg0: i32, %arg1: i32) -> (i32, i32, i32) {
    %c0_i32 = arith.constant 0 : i32
    %c0_i32_0 = arith.constant 0 : i32
    %c0_i32_1 = arith.constant 0 : i32
    %c0_i32_2 = arith.constant 0 : i32
    return %c0_i32, %c0_i32_0, %c0_i32_1 : i32, i32, i32
  }
  func.func @transform_2(%arg0: i32, %arg1: i32) -> (i32, i32) {
    %c0_i32 = arith.constant 0 : i32
    %c0_i32_0 = arith.constant 0 : i32
    %c0_i32_1 = arith.constant 0 : i32
    return %c0_i32, %c0_i32_0 : i32, i32
  }
  func.func @transform_3(%arg0: i32, %arg1: i32) -> (i32, i32) {
    %c0_i32 = arith.constant 0 : i32
    %c0_i32_0 = arith.constant 0 : i32
    return %arg0, %c0_i32 : i32, i32
  }
  func.func @transform_4(%arg0: i32, %arg1: i32) -> (i32, i32) {
    %c0_i32 = arith.constant 0 : i32
    %c0_i32_0 = arith.constant 0 : i32
    return %arg0, %c0_i32 : i32, i32
  }
}

</mosaic_0001>

<bundles_post_ra>
// kernel: tpu_custom_call.1
= control target key start
LH: loop header
LB: loop body
LE: loop exit
PB: predicated region body
PF: predicated region fallthrough
CT: control target
= control target key end

     0   :  { %9 = vsyncpa [#allocation7], 0  ;;  %s777_s0 = inlined_call_operand.hbm [shape: f32[2,1,128], index: 0, kind: input, shape index: {}]   ;;  %s778_s1 = inlined_call_operand.hbm [shape: f32[4,16,128], index: 1, kind: input, shape index: {}]   ;;  %s779_s2 = inlined_call_operand.vmem [shape: f32[1,128], index: 2, kind: input, shape index: {}]   ;;  %s780_s3 = inlined_call_operand.vmem [shape: f32[2,128], index: 3, kind: input, shape index: {}]   ;;  %s781_s4 = inlined_call_operand.hbm [shape: f32[2,128], index: 4, kind: output, shape index: {}]  }
   0x1   :  { %10 = vsyncpa [#allocation10], 0 }
   0x2   :  { %11 = vsyncpa [#allocation8], 0  ;;  %s696_s15 = smov [#allocation6]  }
   0x3   :  { %s17_s16 = sshll.u32 %s696_s15, 4  ;;  %s18_s16 = int_to_ptr.vmem [resolvable:$true] %s17_s16 }
   0x4   :  { %s638_s17 = scalar_lea.vmem %s18_s16, 32  ;;  %p643_p1 = scmp.lt.s32.totalorder %s18_s16, %s18_s16 }
   0x5   :  { %p639_p0 = scmp.ne.s32.totalorder %s18_s16, %s638_s17  ;;  %p644_p2 = scmp.lt.s32.totalorder %s638_s17, %s638_s17 }
   0x7   :  { %p645_p3 = por %p644_p2, %p643_p1 }
   0x9   :  { %p646_p4 = pnand %p645_p3, %p639_p0 }
   0xb   :  { %649 = shalt.err (!%p646_p4)
}
   0xc   :  { %s697_s18 = smov 16   ;;  %s698_s19 = smov 1  }
   0xd   :  { %23 = dma.hbm_to_vmem [thread:$0]  %s777_s0, 32, %s18_s16, [#allocation7], %s697_s18, %s697_s18, %s698_s19  }
   0xe   :  { %s699_s22 = smov [#allocation9]  }
   0xf   :  { %s29_s23 = sshll.u32 %s699_s22, 4  ;;  %s30_s23 = int_to_ptr.vmem [resolvable:$true] %s29_s23 }
  0x10   :  { %s658_s24 = scalar_lea.vmem %s30_s23, 1024  ;;  %p663_p6 = scmp.lt.s32.totalorder %s30_s23, %s30_s23 }
  0x11   :  { %p659_p5 = scmp.ne.s32.totalorder %s30_s23, %s658_s24  ;;  %p664_p7 = scmp.lt.s32.totalorder %s658_s24, %s658_s24 }
  0x13   :  { %p665_p8 = por %p664_p7, %p663_p6 }
  0x15   :  { %p666_p9 = pnand %p665_p8, %p659_p5 }
  0x17   :  { %669 = shalt.err (!%p666_p9)
}
  0x18   :  { %s700_s25 = smov 128   ;;  %s701_s26 = smov 8  }
  0x19   :  { %35 = dma.hbm_to_vmem [thread:$0]  %s778_s1, 1024, %s30_s23, [#allocation10], %s700_s25, %s700_s25, %s701_s26  }
  0x1a   :  { %690 = dma.done.wait [#allocation7], 32  }
  0x1b   :  { %691 = vsyncadd [#allocation7], 4294967264 }
  0x1c   :  { %692 = dma.done.wait [#allocation10], 1024  }
  0x1d   :  { %693 = vsyncadd [#allocation10], 4294966272  ;;  %v61_v0 = vlaneseq  ;;  %v702_v1 = vmov 0.0   ;;  %v703_v2 = vmov 1966171168   ;;  %v704_v5 = vmov inf  }
  0x1e   :  { %53 = vst [vmem:[#allocation2] sm:$0x3] %v702_v1  ;;  %v59_v3 = vunpack.c.l.s4 %v703_v2  ;;  %54 = vst [vmem:[#allocation3] sm:$0x3] %v702_v1  ;;  %585 = vmatprep.subr.mxu0 %v702_v1  ;;  %592 = vmatprep.subr.mxu1 %v702_v1  ;;  %v705_v6 = vmov -inf   ;;  %s707_s29 = smov 96  }
  0x1f   :  { %v62_v4 = vshrl.u32 %v61_v0, 7  ;;  %55 = vst [vmem:[#allocation4] sm:$0x3] %v704_v5  ;;  %56 = vst [vmem:[#allocation5] sm:$0x3] %v705_v6  ;;  %v241_v49 = vld [vmem:[#allocation9 + $0x18] sm:$0xff] }
  0x20   :  { %v60_v7 = vunpack.c.0.s8 %v59_v3  ;;  %v46_v9 = vld [vmem:[#allocation6] sm:$0x1]  ;;  %v47_v10 = vld [vmem:[#allocation6 + $0x1] sm:$0x1]  ;;  %v749_v11 = vld [vmem:[%s780_s3] sm:$0x3]  ;;  %586 = vmatpush3.msra.mxu0 %v241_v49 }
  0x21   :  { %v135_v13 = vcombine.low %v46_v9, %v47_v10  ;;  %s706_s3 = smov 64   ;;  %v238_v50 = vld [vmem:[#allocation9 + $0x8] sm:$0xff]  ;;  %587 = vmatprep.subr.mxu0 %v702_v1  ;;  %v240_v51 = vld [vmem:[#allocation9 + $0x10] sm:$0xff]  ;;  %v237_v52 = vld [vmem:[#allocation9] sm:$0xff]  ;;  %vm708_vm0 = vmmov 0   ;;  %s709_s30 = smov 112  }
  0x22   :  { %v63_v8 = vsub.s32 %v60_v7, %v62_v4  ;;  %593 = vmatpush3.msra.mxu1 %v238_v50  ;;  %588 = vmatpush3.msra.mxu0 %v240_v51  ;;  %vm242_vm1 = vcmask 130048   ;;  %s710_s7 = smov [#allocation11]  }
  0x23   :  { %594 = vmatprep.subr.mxu1 %v702_v1  ;;  %589 = vmatprep.mubr.msk.f32.mxu0 %vm708_vm0, %v702_v1  ;;  %s558_s8 = sshll.u32 %s710_s7, 4  ;;  %s559_s8 = int_to_ptr.vmem [resolvable:$true] %s558_s8 }
  0x24   :  { %v64_v12 = vrot.slane %v749_v11, %v63_v8  ;;  %v142_v16 = vrot.slane %v135_v13, %v63_v8  ;;  %595 = vmatpush3.msra.mxu1 %v237_v52  ;;  %596 = vmatprep.mubr.msk.f32.mxu1 %vm708_vm0, %v702_v1  ;;  %s670_s9 = scalar_lea.vmem %s559_s8, 32  ;;  %p675_p11 = scmp.lt.s32.totalorder %s559_s8, %s559_s8 }
  0x25   :  { %v86_v30 = vld [vmem:[#allocation2] sm:$0x3]  ;;  %v109_v33 = vld [vmem:[#allocation3] sm:$0x3]  ;;  %599 = vmatprep.subr.mxu0 %v702_v1  ;;  %606 = vmatprep.subr.mxu1 %v702_v1  ;;  %p671_p10 = scmp.ne.s32.totalorder %s559_s8, %s670_s9  ;;  %p676_p12 = scmp.lt.s32.totalorder %s670_s9, %s670_s9 }
  0x26   :  { %v65_v14 = vcombine.high %v64_v12, %v64_v12  ;;  %v72_v15 = vrot.slane %v64_v12, %v63_v8  ;;  %v132_v17 = vld [vmem:[#allocation4] sm:$0x3]  ;;  %v153_v18 = vld [vmem:[#allocation5] sm:$0x3]  ;;  %v149_v21 = vrot.slane %v142_v16, %v63_v8  ;;  %v390_v12 = vld [vmem:[#allocation9 + $0x20] sm:$0xff] }
  0x27   :  { %p677_p13 = por %p676_p12, %p675_p11 }
  0x28   :  { %v79_v19 = vrot.slane %v65_v14, %v63_v8  ;;  %v82_v20 = vsub.f32 %v46_v9, %v72_v15  ;;  %v151_v23 = vmin.f32 %v132_v17, %v149_v21  ;;  %v154_v25 = vmax.f32 %v153_v18, %v149_v21  ;;  %v468_v9 = vld [vmem:[#allocation9 + $0x38] sm:$0xff]  ;;  %v467_v14 = vld [vmem:[#allocation9 + $0x30] sm:$0xff] }
  0x29   :  { %p678_p0 = pnand %p677_p13, %p671_p10 }
  0x2a   :  { %v83_v22 = vsub.f32 %v47_v10, %v79_v19  ;;  %v84_v24 = vmul.f32 %v82_v20, %v82_v20  ;;  %152 = vst [vmem:[#allocation4] sm:$0x3] %v151_v23  ;;  %155 = vst [vmem:[#allocation5] sm:$0x3] %v154_v25 }
  0x2c   :  { %v91_v26 = vcombine.low %v82_v20, %v83_v22  ;;  %v85_v27 = vmul.f32 %v83_v22, %v83_v22 }
  0x2e   :  { %v98_v28 = vrot.slane %v91_v26, %v63_v8  ;;  %v114_v29 = vcombine.low %v84_v24, %v85_v27 }
  0x30   :  { %v105_v31 = vrot.slane %v98_v28, %v63_v8  ;;  %v121_v32 = vrot.slane %v114_v29, %v63_v8 }
  0x31   :  { %v191_v36 = vld [vmem:[#allocation4] sm:$0x3]  ;;  %v207_v38 = vld [vmem:[#allocation5] sm:$0x3] }
  0x32   :  { %v107_v34 = vadd.f32 %v105_v31, %v86_v30  ;;  %v128_v35 = vrot.slane %v121_v32, %v63_v8  ;;  %193 = vrot.lane.b32.xlu1 %v191_v36, %s706_s3  ;;  %v391_v8 = vld [vmem:[#allocation9 + $0x28] sm:$0xff] }
  0x34   :  { %108 = vst [vmem:[#allocation2] sm:$0x3] %v107_v34  ;;  %v130_v37 = vadd.f32 %v128_v35, %v109_v33 }
  0x36   :  { %131 = vst [vmem:[#allocation3] sm:$0x3] %v130_v37  ;;  %209 = vrot.lane.b32.xlu1 %v207_v38, %s706_s3 }
  0x3b   :  { %v159_v39 = vld [vmem:[#allocation2] sm:$0x3] }
  0x3c   :  { %161 = vrot.lane.b32.xlu0 %v159_v39, %s706_s3 }
  0x3d   :  { %v175_v40 = vld [vmem:[#allocation3] sm:$0x3] }
  0x40   :  { %177 = vrot.lane.b32.xlu0 %v175_v40, %s706_s3 }
  0xa4   :  { %v194_v41 = vpop.permute.xlu1 %193 }
  0xa5   :  { %v196_v44 = vmin.f32 %v191_v36, %v194_v41 }
  0xa8   :  { %v210_v46 = vpop.permute.xlu1 %209 }
  0xa9   :  { %v212_v48 = vmax.f32 %v207_v38, %v210_v46 }
  0xae   :  { %v162_v42 = vpop.permute.xlu0 %161 }
  0xaf   :  { %v164_v43 = vadd.f32 %v162_v42, %v159_v39 }
  0xb1   :  { %166 = vrot.lane.b32.xlu0 %v164_v43, %s707_s29 }
  0xb2   :  { %v178_v45 = vpop.permute.xlu0 %177 }
  0xb3   :  { %v180_v47 = vadd.f32 %v178_v45, %v175_v40 }
  0xb5   :  { %198 = vrot.lane.b32.xlu0 %v196_v44, %s707_s29  ;;  %182 = vrot.lane.b32.xlu1 %v180_v47, %s707_s29 }
  0xb9   :  { %214 = vrot.lane.b32.xlu1 %v212_v48, %s707_s29 }
 0x123   :  { %v167_v53 = vpop.permute.xlu0 %166 }
 0x124   :  { %v169_v54 = vadd.f32 %v167_v53, %v164_v43 }
 0x126   :  { %171 = vrot.lane.b32.xlu0 %v169_v54, %s709_s30 }
 0x127   :  { %v183_v55 = vpop.permute.xlu1 %182  ;;  %v199_v56 = vpop.permute.xlu0 %198 }
 0x128   :  { %v185_v57 = vadd.f32 %v183_v55, %v180_v47  ;;  %v201_v58 = vmin.f32 %v196_v44, %v199_v56 }
 0x12a   :  { %187 = vrot.lane.b32.xlu1 %v185_v57, %s709_s30  ;;  %203 = vrot.lane.b32.xlu0 %v201_v58, %s709_s30 }
 0x12b   :  { %v215_v59 = vpop.permute.xlu1 %214 }
 0x12c   :  { %v217_v60 = vmax.f32 %v212_v48, %v215_v59 }
 0x12e   :  { %219 = vrot.lane.b32.xlu1 %v217_v60, %s709_s30 }
 0x198   :  { %v172_v61 = vpop.permute.xlu0 %171 }
 0x199   :  { %v174_v62 = vadd.f32 %v172_v61, %v169_v54 }
 0x19b   :  { %v223_v63 = vmul.f32 0.125, %v174_v62  ;;  %v225_v0 = vmul.f32 %v174_v62, %v174_v62 }
 0x19c   :  { %v188_v2 = vpop.permute.xlu1 %187  ;;  %v204_v3 = vpop.permute.xlu0 %203 }
 0x19d   :  { %v224_v4 = vadd.f32 %v223_v63, %v749_v11  ;;  %v226_v5 = vmul.f32 0.125, %v225_v0  ;;  %v190_v6 = vadd.f32 %v188_v2, %v185_v57  ;;  %v206_v7 = vmin.f32 %v201_v58, %v204_v3 }
 0x19f   :  { %v227_v10 = vsub.f32 %v190_v6, %v226_v5  ;;  %590 = vmatmul.mubr.msk.f32.vlgmr.msra.gmra.mxu0 %vm242_vm1, %v206_v7  ;;  %597 = vmatmul.mubr.msk.f32.vlgmr.msra.gmra.mxu1 %vm242_vm1, %v224_v4 }
 0x1a0   :  { %v220_v13 = vpop.permute.xlu1 %219  ;;  %600 = vmatpush3.msra.mxu0 %v391_v8  ;;  %603 = vmatprep.mubr.msk.f32.mxu0 %vm708_vm0, %v702_v1 }
 0x1a1   :  { %v228_v15 = vmul.f32 0.14285715, %v227_v10  ;;  %v222_v16 = vmax.f32 %v217_v60, %v220_v13  ;;  %601 = vmatprep.subr.mxu0 %v702_v1  ;;  %607 = vmatpush3.msra.mxu1 %v468_v9 }
 0x1a2   :  { %602 = vmatpush3.msra.mxu0 %v390_v12  ;;  %608 = vmatprep.subr.mxu1 %v702_v1 }
 0x1a3   :  { %v229_v11 = vmax.f32 %v228_v15, 0.0  ;;  %604 = vmatmul.mubr.msk.f32.vlgmr.msra.gmra.mxu0 %vm242_vm1, %v222_v16  ;;  %609 = vmatpush3.msra.mxu1 %v467_v14 }
 0x1a4   :  { %610 = vmatprep.mubr.msk.f32.mxu1 %vm708_vm0, %v702_v1  ;;  %v572_v1 = vld [vmem:[%s779_s2] ss:$0 sm:$0xff] }
 0x1a5   :  { %628 = vrsqrt.f32 %v229_v11  ;;  %vm232_vm2 = vcmp.eq.f32.partialorder %v229_v11, inf  ;;  %v235_v19 = vand.u32 2147483648, %v229_v11  ;;  %vm234_vm3 = vcmp.eq.f32.partialorder %v229_v11, 0.0 }
 0x1b2   :  { %v629_v17 = vpop.eup %628 }
 0x1b3   :  { %v231_v18 = vmul.f32 %v629_v17, %v229_v11 }
 0x1b5   :  { %v233_v20 = vsel %vm232_vm2, %v229_v11, %v231_v18 }
 0x1b6   :  { %v236_v21 = vsel %vm234_vm3, %v235_v19, %v233_v20 }
 0x1b7   :  { %611 = vmatmul.mubr.msk.f32.vlgmr.msra.gmra.mxu1 %vm242_vm1, %v236_v21 }
 0x25f   :  { %v312_v22 = vpop.f32.mrf.mxu0  ;;  %v385_v23 = vpop.f32.mrf.mxu1 }
 0x260   :  { %v386_v28 = vadd.f32 %v385_v23, %v312_v22 }
 0x261   :  { %v591_v24 = vpop.f32.mrf.mxu0  ;;  %v598_v25 = vpop.f32.mrf.mxu1 }
 0x263   :  { %v461_v26 = vpop.f32.mrf.mxu0 }
 0x264   :  { %v465_v29 = vadd.f32 %v461_v26, %v386_v28 }
 0x265   :  { %v605_v27 = vpop.f32.mrf.mxu0 }
 0x277   :  { %v538_v30 = vpop.f32.mrf.mxu1 }
 0x278   :  { %v542_v31 = vadd.f32 %v538_v30, %v465_v29 }
 0x279   :  { %v612_v32 = vpop.f32.mrf.mxu1 }
 0x27a   :  { %v550_v33 = vadd.f32 %v572_v1, %v542_v31 }
 0x27c   :  { %551 = vst [vmem:[#allocation11] sm:$0x3] %v550_v33 }
 0x27d   :  { %681 = shalt.err (!%p678_p0)
}
 0x27e   :  { %561 = dma.vmem_to_hbm [thread:$0]  %s559_s8, 32, %s781_s4, [#allocation8]  }
 0x27f   :  { %694 = dma.done.wait [#allocation8], 32  }
 0x280   :  { %695 = vsyncadd [#allocation8], 4294967264 }
 0x281   :  { %565 = vsyncpa [#allocation7], 1 }
 0x282   :  { %566 = vsyncpa [#allocation10], 1 }
 0x283   :  { %567 = vsyncpa [#allocation8], 1 }

</bundles_post_ra>
